<compile_context>
chip_gen: v7x
topology: tpu7x:2x2x1
jax: 0.10.0
libtpu: 0.0.40
codegen_flags: <defaults>
</compile_context>

<pallas_src>
import functools

import jax
import jax.numpy as jnp
from jax.experimental import pallas as pl
from jax.experimental.pallas import tpu as pltpu


def _round_up(x, m):
    return ((x + m - 1) // m) * m


def _mlp_kernel(x_ref, w1_ref, b1_ref, w2_ref, b2_ref, w3_ref, b3_ref, o_ref):
    # Whole 3-layer MLP fused; batch on the lane axis.
    x = x_ref[...]                                                          # (7, bn)
    h1 = jnp.dot(w1_ref[...], x, preferred_element_type=jnp.float32) + b1_ref[...]
    h1 = jnp.maximum(h1, 0.0)                                               # (18, bn)
    h2 = jnp.dot(w2_ref[...], h1, preferred_element_type=jnp.float32) + b2_ref[...]
    h2 = jnp.maximum(h2, 0.0)                                               # (9, bn)
    out = jnp.dot(w3_ref[...], h2, preferred_element_type=jnp.float32) + b3_ref[...]
    o_ref[...] = out.astype(o_ref.dtype)                                    # (3, bn)


def classification_forward_fm(xt, params, *, bn_max=32768, core_parallel=False):
    """Feature-major forward pass: xt is (7, N) float32, returns (3, N) logits.

    This is the preferred entry point — no layout copies, the kernel is the only
    HBM pass over the activations.
    """
    d_in, n = xt.shape
    assert d_in == 7
    w1, b1 = params["w1"], params["b1"]
    w2, b2 = params["w2"], params["b2"]
    w3, b3 = params["w3"], params["b3"]

    # Pad the batch only to a lane multiple (128); the grid uses cdiv so the last
    # block may be ragged (Pallas clips the DMA / masks the output store).
    n_pad = _round_up(n, 128)
    if n_pad != n:
        xt = jnp.pad(xt, ((0, 0), (0, n_pad - n)))

    bn = min(_round_up(bn_max, 128), n_pad)        # lane tile, multiple of 128
    grid = (pl.cdiv(n_pad, bn),)

    full = lambda a: pl.BlockSpec(a.shape, lambda i: (0, 0))  # tiny, VMEM-resident

    weight_bytes = sum(int(a.size) * 4 for a in (w1, b1, w2, b2, w3, b3))
    cost = pl.CostEstimate(
        flops=2 * n_pad * (7 * 18 + 18 * 9 + 9 * 3),
        transcendentals=0,
        bytes_accessed=n_pad * (7 + 3) * 4 + weight_bytes,
    )

    # "parallel" on 1-TC chips (v5e/v6e); CORE_PARALLEL actually shards grid steps
    # across the 2 TensorCores on v7x.
    batch_sem = pltpu.CORE_PARALLEL if core_parallel else "parallel"

    out_t = pl.pallas_call(
        _mlp_kernel,
        out_shape=jax.ShapeDtypeStruct((3, n_pad), jnp.float32),
        grid_spec=pltpu.PrefetchScalarGridSpec(
            num_scalar_prefetch=0,
            grid=grid,
            in_specs=[
                pl.BlockSpec((7, bn), lambda i: (0, i)),   # x tile (lane-dense)
                full(w1), full(b1),
                full(w2), full(b2),
                full(w3), full(b3),
            ],
            out_specs=pl.BlockSpec((3, bn), lambda i: (0, i)),
        ),
        compiler_params=pltpu.CompilerParams(dimension_semantics=(batch_sem,)),
        cost_estimate=cost,
    )(xt, w1, b1, w2, b2, w3, b3)

    return out_t[:, :n]


def classification_forward(x, params, *, bn_max=32768, core_parallel=False):
    """PyTorch-interface forward: x is (N, 7) float32, returns (N, 3) logits.

    The transposes here are layout plumbing only (fused by XLA where possible);
    callers that can keep activations feature-major should use
    classification_forward_fm to avoid the extra HBM passes.
    """
    out_t = classification_forward_fm(
        jnp.transpose(x), params, bn_max=bn_max, core_parallel=core_parallel)
    return jnp.transpose(out_t)


def init_params(key):
    """Deterministic init matching PyTorch nn.Linear defaults; (out, in) weight layout."""
    dims = [(7, 18), (18, 9), (9, 3)]
    params = {}
    for idx, (fan_in, fan_out) in enumerate(dims, start=1):
        key, kw, kb = jax.random.split(key, 3)
        bound = 1.0 / jnp.sqrt(float(fan_in))
        params[f"w{idx}"] = jax.random.uniform(
            kw, (fan_out, fan_in), jnp.float32, -bound, bound)
        params[f"b{idx}"] = jax.random.uniform(
            kb, (fan_out, 1), jnp.float32, -bound, bound)
    return params


def reference_forward(x, params):
    h1 = jnp.maximum(x @ params["w1"].T + params["b1"].T, 0.0)
    h2 = jnp.maximum(h1 @ params["w2"].T + params["b2"].T, 0.0)
    return h2 @ params["w3"].T + params["b3"].T


if __name__ == "__main__":
    key = jax.random.PRNGKey(0)
    kx, kx2, kp = jax.random.split(key, 3)
    params = init_params(kp)

    # Small batch matching the module interface: (8, 7) -> (8, 3).
    x = jax.random.normal(kx, (8, 7), dtype=jnp.float32)
    fwd = jax.jit(functools.partial(classification_forward, bn_max=32768))
    out = jax.block_until_ready(fwd(x, params))
    ref = reference_forward(x, params)
    assert out.shape == (8, 3)
    assert jnp.allclose(out, ref, atol=1e-5, rtol=1e-5), "mismatch vs reference (small batch)"

    # Second check exercising a multi-step grid with a ragged last block
    # (N=300 pads to 384; bn=256 -> grid of 2, last block partially out of bounds).
    x2 = jax.random.normal(kx2, (300, 7), dtype=jnp.float32)
    fwd2 = jax.jit(functools.partial(classification_forward, bn_max=256))
    out2 = jax.block_until_ready(fwd2(x2, params))
    ref2 = reference_forward(x2, params)
    assert out2.shape == (300, 3)
    assert jnp.allclose(out2, ref2, atol=1e-5, rtol=1e-5), "mismatch vs reference (ragged grid)"

    print("KERNEL_OK")
</pallas_src>

<mosaic_0001>
module attributes {stable_mosaic.version = 11 : i64} {
  func.func @_mlp_kernel(%arg0: i32, %arg1: memref<7x128xf32, #tpu.memory_space<vmem>>, %arg2: memref<18x7xf32, #tpu.memory_space<vmem>>, %arg3: memref<18x1xf32, #tpu.memory_space<vmem>>, %arg4: memref<9x18xf32, #tpu.memory_space<vmem>>, %arg5: memref<9x1xf32, #tpu.memory_space<vmem>>, %arg6: memref<3x9xf32, #tpu.memory_space<vmem>>, %arg7: memref<3x1xf32, #tpu.memory_space<vmem>>, %arg8: memref<3x128xf32, #tpu.memory_space<vmem>>) attributes {dimension_semantics = [#tpu.dimension_semantics<parallel>], iteration_bounds = array<i64: 1>, scalar_prefetch = 0 : i64, scratch_operands = 0 : i64, tpu.core_type = #tpu.core_type<tc>, window_params = [{transform_indices = @transform_0, window_bounds = array<i64: 7, 128>}, {pipeline_mode = #tpu.pipeline_mode<synchronous>, transform_indices = @transform_1, window_bounds = array<i64: 18, 7>}, {pipeline_mode = #tpu.pipeline_mode<synchronous>, transform_indices = @transform_2, window_bounds = array<i64: 18, 1>}, {pipeline_mode = #tpu.pipeline_mode<synchronous>, transform_indices = @transform_3, window_bounds = array<i64: 9, 18>}, {pipeline_mode = #tpu.pipeline_mode<synchronous>, transform_indices = @transform_4, window_bounds = array<i64: 9, 1>}, {pipeline_mode = #tpu.pipeline_mode<synchronous>, transform_indices = @transform_5, window_bounds = array<i64: 3, 9>}, {pipeline_mode = #tpu.pipeline_mode<synchronous>, transform_indices = @transform_6, window_bounds = array<i64: 3, 1>}, {transform_indices = @transform_7, window_bounds = array<i64: 3, 128>}]} {
    %c0 = arith.constant 0 : index
    %c0_0 = arith.constant 0 : index
    %0 = vector.load %arg1[%c0, %c0_0] : memref<7x128xf32, #tpu.memory_space<vmem>>, vector<7x128xf32>
    %c0_1 = arith.constant 0 : index
    %c0_2 = arith.constant 0 : index
    %1 = vector.load %arg2[%c0_1, %c0_2] : memref<18x7xf32, #tpu.memory_space<vmem>>, vector<18x7xf32>
    %cst = arith.constant dense<0.000000e+00> : vector<18x128xf32>
    %2 = tpu.matmul %1, %0, %cst {dimension_numbers = #tpu.dot_dimension_numbers<[1], [0], [0], [1], [0, 0, 1, 1], [], []>} : vector<18x7xf32>, vector<7x128xf32>, vector<18x128xf32> -> vector<18x128xf32>
    %c0_3 = arith.constant 0 : index
    %c0_4 = arith.constant 0 : index
    %3 = vector.load %arg3[%c0_3, %c0_4] : memref<18x1xf32, #tpu.memory_space<vmem>>, vector<18x1xf32>
    %4 = vector.broadcast %3 : vector<18x1xf32> to vector<18x128xf32>
    %5 = arith.addf %2, %4 : vector<18x128xf32>
    %cst_5 = arith.constant 0.000000e+00 : f32
    %6 = vector.broadcast %cst_5 : f32 to vector<18x128xf32>
    %7 = arith.maximumf %5, %6 : vector<18x128xf32>
    %c0_6 = arith.constant 0 : index
    %c0_7 = arith.constant 0 : index
    %8 = vector.load %arg4[%c0_6, %c0_7] : memref<9x18xf32, #tpu.memory_space<vmem>>, vector<9x18xf32>
    %cst_8 = arith.constant dense<0.000000e+00> : vector<9x128xf32>
    %9 = tpu.matmul %8, %7, %cst_8 {dimension_numbers = #tpu.dot_dimension_numbers<[1], [0], [0], [1], [0, 0, 1, 1], [], []>} : vector<9x18xf32>, vector<18x128xf32>, vector<9x128xf32> -> vector<9x128xf32>
    %c0_9 = arith.constant 0 : index
    %c0_10 = arith.constant 0 : index
    %10 = vector.load %arg5[%c0_9, %c0_10] : memref<9x1xf32, #tpu.memory_space<vmem>>, vector<9x1xf32>
    %11 = vector.broadcast %10 : vector<9x1xf32> to vector<9x128xf32>
    %12 = arith.addf %9, %11 : vector<9x128xf32>
    %cst_11 = arith.constant 0.000000e+00 : f32
    %13 = vector.broadcast %cst_11 : f32 to vector<9x128xf32>
    %14 = arith.maximumf %12, %13 : vector<9x128xf32>
    %c0_12 = arith.constant 0 : index
    %c0_13 = arith.constant 0 : index
    %15 = vector.load %arg6[%c0_12, %c0_13] : memref<3x9xf32, #tpu.memory_space<vmem>>, vector<3x9xf32>
    %cst_14 = arith.constant dense<0.000000e+00> : vector<3x128xf32>
    %16 = tpu.matmul %15, %14, %cst_14 {dimension_numbers = #tpu.dot_dimension_numbers<[1], [0], [0], [1], [0, 0, 1, 1], [], []>} : vector<3x9xf32>, vector<9x128xf32>, vector<3x128xf32> -> vector<3x128xf32>
    %c0_15 = arith.constant 0 : index
    %c0_16 = arith.constant 0 : index
    %17 = vector.load %arg7[%c0_15, %c0_16] : memref<3x1xf32, #tpu.memory_space<vmem>>, vector<3x1xf32>
    %18 = vector.broadcast %17 : vector<3x1xf32> to vector<3x128xf32>
    %19 = arith.addf %16, %18 : vector<3x128xf32>
    %c0_17 = arith.constant 0 : index
    %c0_18 = arith.constant 0 : index
    %20 = vector.load %arg8[%c0_17, %c0_18] : memref<3x128xf32, #tpu.memory_space<vmem>>, vector<3x128xf32>
    tpu.vector_store %arg8[%c0_17, %c0_18], %19 {strides = array<i32>} : memref<3x128xf32, #tpu.memory_space<vmem>>, vector<3x128xf32>,
    return
  }
  func.func @transform_0(%arg0: i32) -> (i32, i32) {
    %c0_i32 = arith.constant 0 : i32
    %c0_i32_0 = arith.constant 0 : i32
    return %c0_i32, %arg0 : i32, i32
  }
  func.func @transform_1(%arg0: i32) -> (i32, i32) {
    %c0_i32 = arith.constant 0 : i32
    %c0_i32_0 = arith.constant 0 : i32
    %c0_i32_1 = arith.constant 0 : i32
    return %c0_i32, %c0_i32_0 : i32, i32
  }
  func.func @transform_2(%arg0: i32) -> (i32, i32) {
    %c0_i32 = arith.constant 0 : i32
    %c0_i32_0 = arith.constant 0 : i32
    %c0_i32_1 = arith.constant 0 : i32
    return %c0_i32, %c0_i32_0 : i32, i32
  }
  func.func @transform_3(%arg0: i32) -> (i32, i32) {
    %c0_i32 = arith.constant 0 : i32
    %c0_i32_0 = arith.constant 0 : i32
    %c0_i32_1 = arith.constant 0 : i32
    return %c0_i32, %c0_i32_0 : i32, i32
  }
  func.func @transform_4(%arg0: i32) -> (i32, i32) {
    %c0_i32 = arith.constant 0 : i32
    %c0_i32_0 = arith.constant 0 : i32
    %c0_i32_1 = arith.constant 0 : i32
    return %c0_i32, %c0_i32_0 : i32, i32
  }
  func.func @transform_5(%arg0: i32) -> (i32, i32) {
    %c0_i32 = arith.constant 0 : i32
    %c0_i32_0 = arith.constant 0 : i32
    %c0_i32_1 = arith.constant 0 : i32
    return %c0_i32, %c0_i32_0 : i32, i32
  }
  func.func @transform_6(%arg0: i32) -> (i32, i32) {
    %c0_i32 = arith.constant 0 : i32
    %c0_i32_0 = arith.constant 0 : i32
    %c0_i32_1 = arith.constant 0 : i32
    return %c0_i32, %c0_i32_0 : i32, i32
  }
  func.func @transform_7(%arg0: i32) -> (i32, i32) {
    %c0_i32 = arith.constant 0 : i32
    %c0_i32_0 = arith.constant 0 : i32
    return %c0_i32, %arg0 : i32, i32
  }
}

</mosaic_0001>

<bundles_post_ra>
// kernel: classification_forward.1
= control target key start
LH: loop header
LB: loop body
LE: loop exit
PB: predicated region body
PF: predicated region fallthrough
CT: control target
= control target key end

     0   :  { %vm58_vm0 = vcmask 1046528   ;;  %vm48_vm1 = vcmask 56320   ;;  %v400_v0 = vmov 0.0   ;;  %vm401_vm2 = vmmov 0   ;;  %s496_s0 = inlined_call_operand.vmem [shape: f32[7,128], index: 0, kind: input, shape index: {}]   ;;  %s497_s1 = inlined_call_operand.vmem [shape: f32[18,7], index: 1, kind: input, shape index: {}]   ;;  %s498_s2 = inlined_call_operand.vmem [shape: f32[18,1], index: 2, kind: input, shape index: {}]   ;;  %s499_s4 = inlined_call_operand.vmem [shape: f32[9,1], index: 4, kind: input, shape index: {}]   ;;  %s500_s6 = inlined_call_operand.vmem [shape: f32[3,1], index: 6, kind: input, shape index: {}]   ;;  %s501_s3 = inlined_call_operand.vmem [shape: f32[9,18], index: 3, kind: input, shape index: {}]   ;;  %s502_s5 = inlined_call_operand.vmem [shape: f32[3,9], index: 5, kind: input, shape index: {}]   ;;  %s503_s7 = inlined_call_operand.vmem [shape: f32[3,128], index: 7, kind: output, shape index: {}]  }
   0x1   :  { %358 = vmatprep.subr.mxu0 %v400_v0  ;;  %v26_v1 = vld [vmem:[%s496_s0] sm:$0x7f]  ;;  %360 = vmatprep.mubr.msk.f32.mxu0 %vm401_vm2, %v400_v0  ;;  %v402_v3 = vmov 0   ;;  %v32_v5 = vld [vmem:[%s498_s2 + $0x10] sm:$0x3]  ;;  %v28_v6 = vld [vmem:[%s497_s1 + $0x8] sm:$0xff] }
   0x2   :  { %v27_v2 = vld [vmem:[%s497_s1] sm:$0xff]  ;;  %359 = vmatpush3.msk.msra.mxu0 %vm58_vm0, %v26_v1  ;;  %398 = vset.pattern.permute.xlu0 %v402_v3  ;;  %v31_v7 = vld [vmem:[%s498_s2 + $0x8] sm:$0xff]  ;;  %v29_v9 = vld [vmem:[%s497_s1 + $0x10] sm:$0x3]  ;;  %vm159_vm3 = vcmask 146432   ;;  %vm166_vm4 = vcmask 1041408  }
   0x3   :  { %v30_v4 = vld [vmem:[%s498_s2] sm:$0xff]  ;;  %361 = vmatmul.mubr.msk.f32.vlgmr.msra.gmra.mrb[0].mxu0 %vm48_vm1, %v27_v2  ;;  %399 = vset.pattern.permute.xlu1 %v402_v3  ;;  %v148_v10 = vld [vmem:[%s499_s4 + $0x8] sm:$0x1]  ;;  %v403_v30 = vmov 0.0|0.0   ;;  %vm258_vm5 = vcmask 1040384   ;;  %vm404_vm6 = vmmov 1  }
   0x4   :  { %35 = vperm.xlu0 %398, %v30_v4   ;;  %363 = vmatprep.mubr.msk.f32.mxu0 %vm401_vm2, %v400_v0  ;;  %v147_v8 = vld [vmem:[%s499_s4] sm:$0xff]  ;;  %v146_v29 = vld [vmem:[%s501_s3 + $0x8] sm:$0x1]  ;;  %vm391_vm7 = vmpackc.low %vm258_vm5, %vm404_vm6  ;;  %vm254_vm8 = vcmask 72704  }
   0x5   :  { %45 = vperm.xlu1 %399, %v32_v5   ;;  %v248_v11 = vld [vmem:[%s500_s6] sm:$0x7] }
   0x6   :  { %v145_v12 = vld [vmem:[%s501_s3] sm:$0xff] }
   0x7   :  { %364 = vmatmul.mubr.msk.f32.gmra.mrb[2].mxu0 %vm48_vm1, %v28_v6  ;;  %375 = vmatprep.mubr.msk.f32.mxu1 %vm159_vm3, %v145_v12  ;;  %v247_v40 = vld [vmem:[%s502_s5] sm:$0x7] }
   0x8   :  { %40 = vperm.xlu0 %398, %v31_v7   ;;  %366 = vmatprep.mubr.msk.f32.mxu0 %vm401_vm2, %v400_v0 }
   0x9   :  { %151 = vperm.xlu1 %399, %v147_v8  }
   0xb   :  { %367 = vmatmul.mubr.msk.f32.gmra.mrb[4].mxu0 %vm48_vm1, %v29_v9 }
   0xc   :  { %156 = vperm.xlu0 %398, %v148_v10  }
   0xd   :  { %251 = vperm.xlu1 %399, %v248_v11  }
  0x83   :  { %v36_v13 = vpop.permute.xlu0 %35 }
  0x84   :  { %v46_v23 = vpop.permute.xlu1 %45 }
  0x87   :  { %v41_v17 = vpop.permute.xlu0 %40 }
  0x88   :  { %v152_v33 = vpop.permute.xlu1 %151 }
  0x8b   :  { %v157_v31 = vpop.permute.xlu0 %156 }
  0x8c   :  { %v252_v41 = vpop.permute.xlu1 %251 }
  0xd6   :  { %v128_v14 = vpop.f32.mrb[0].mxu0 }
  0xd7   :  { %v362_v15 = vpop.f32.mrb[1].mxu0  ;;  %v129_v16 = vadd.f32 %v128_v14, %v36_v13 }
  0xd9   :  { %v142_v21 = vmax.f32 %v129_v16, 0.0 }
  0xda   :  { %v133_v18 = vpop.f32.mrb[2].mxu0 }
  0xdb   :  { %v134_v19 = vadd.f32 %v133_v18, %v41_v17  ;;  %v365_v20 = vpop.f32.mrb[3].mxu0 }
  0xdd   :  { %v143_v22 = vmax.f32 %v134_v19, 0.0 }
  0xde   :  { %v138_v24 = vpop.f32.mrb[4].mxu0 }
  0xdf   :  { %v139_v25 = vadd.f32 %v138_v24, %v46_v23  ;;  %v368_v26 = vpop.f32.mrb[5].mxu0  ;;  %v385_v27 = vpack.c.bf16 %v143_v22, %v142_v21 }
  0xe1   :  { %v144_v28 = vmax.f32 %v139_v25, 0.0  ;;  %386 = vmatprep.subr.bf16.mxu1 %v385_v27 }
  0xe2   :  { %388 = vmatpush3.bf16.msra.mxu1 %v385_v27 }
  0xe3   :  { %373 = vmatprep.subr.msk.mxu1 %vm166_vm4, %v144_v28 }
  0xe6   :  { %374 = vmatpush3.msk.msra.mxu1 %vm166_vm4, %v144_v28 }
  0xe7   :  { %376 = vmatmul.mubr.msk.f32.vlgmr.msra.gmra.mrb[0].mxu1 %vm159_vm3, %v146_v29  ;;  %389 = vmatprep.subr.bf16.mxu1 %v403_v30 }
  0xe8   :  { %382 = vmatprep.mubr.msk.f32.mxu1 %vm401_vm2, %v400_v0 }
 0x1ba   :  { %v377_v32 = vpop.f32.mrb[0].mxu1 }
 0x1bb   :  { %v242_v34 = vadd.f32 %v377_v32, %v157_v31  ;;  %v236_v35 = vpop.f32.mrb[1].mxu1 }
 0x1bc   :  { %v237_v36 = vadd.f32 %v236_v35, %v152_v33 }
 0x1bd   :  { %v246_v37 = vmax.f32 %v242_v34, 0.0 }
 0x1be   :  { %v245_v38 = vmax.f32 %v237_v36, 0.0 }
 0x1c0   :  { %v390_v39 = vpack.c.bf16 %v246_v37, %v245_v38 }
 0x1c2   :  { %392 = vmatpush3.bf16.msk.msra.mxu1 %vm391_vm7, %v390_v39 }
 0x1c5   :  { %383 = vmatmul.mubr.msk.f32.vlgmr.msra.gmra.mrb[2].mxu1 %vm254_vm8, %v247_v40 }
 0x298   :  { %v328_v42 = vpop.f32.mrb[2].mxu1 }
 0x299   :  { %v329_v43 = vadd.f32 %v328_v42, %v252_v41  ;;  %v384_v44 = vpop.f32.mrb[3].mxu1 }
 0x29b   :  { %332 = vst [vmem:[%s503_s7] sm:$0x7] %v329_v43 }

</bundles_post_ra>
